<compile_context>
chip_gen: v6e
topology: v6e:2x2x1
jax: 0.10.0
libtpu: 0.0.40
codegen_flags: <defaults>
</compile_context>

<pallas_src>
import functools

import jax
import jax.numpy as jnp
from jax.experimental import pallas as pl
from jax.experimental.pallas import tpu as pltpu


def _mlp_kernel(x_ref, w1_ref, b1_ref, w2_ref, b2_ref, o_ref):
    # Hidden layer: (TB, F2) @ (F2, F1) + (1, F1), ReLU on the VPU (free filler
    # under the MXU/HBM slack).
    h = jnp.dot(x_ref[...], w1_ref[...], preferred_element_type=jnp.float32)
    h = jnp.maximum(h + b1_ref[...], 0.0)
    # Output layer: (TB, F1) @ (F1, D) + (1, D); lane-dense (TB, D) store.
    y = jnp.dot(h, w2_ref[...], preferred_element_type=jnp.float32)
    o_ref[...] = (y + b2_ref[...]).astype(o_ref.dtype)


def prepare_params(w1, b1, w2, b2):
    """One-time parameter repack (call once at setup, NOT per forward).

    Converts PyTorch nn.Linear (out, in) weights to (in, out) so the kernel
    runs plain `x @ W` MXU matmuls, and makes biases 2-D rows for clean
    lane-wise broadcasting inside VMEM.
    """
    return (
        jnp.transpose(w1),   # (f2, f1)
        b1.reshape(1, -1),   # (1, f1)
        jnp.transpose(w2),   # (f1, d)
        b2.reshape(1, -1),   # (1, d)
    )


def _round_up(n, m):
    return -(-n // m) * m


@functools.partial(jax.jit, static_argnames=("tile_b",))
def simplenet2_forward(x, w1t, b1r, w2t, b2r, *, tile_b=4096):
    """Pallas forward pass for SimpleNet2.

    Args:
      x:   (B, x_fdim2) float32
      w1t: (x_fdim2, x_fdim1) float32  -- from prepare_params
      b1r: (1, x_fdim1) float32
      w2t: (x_fdim1, ipVec_dim) float32
      b2r: (1, ipVec_dim) float32
    Returns:
      (B, ipVec_dim) float32
    """
    B, f2 = x.shape
    f1 = w1t.shape[1]
    d = w2t.shape[1]

    # Batch tile: as large as the scoped-VMEM budget comfortably allows
    # (amortizes per-grid-step overhead), but never more than ceil(B/2)
    # rounded to a sublane multiple so the "parallel" axis has >= 2 steps.
    half_b = max(8, _round_up(_round_up(B, 2) // 2, 8))
    tb = max(8, min(tile_b, half_b))
    grid_b = pl.cdiv(B, tb)  # ragged last block: OOB output rows are masked

    itemsize = jnp.dtype(x.dtype).itemsize
    cost = pl.CostEstimate(
        flops=2 * B * (f2 * f1 + f1 * d),
        transcendentals=0,
        bytes_accessed=B * (f2 + d) * itemsize
        + (f2 * f1 + f1 + f1 * d + d) * itemsize,
    )

    return pl.pallas_call(
        _mlp_kernel,
        out_shape=jax.ShapeDtypeStruct((B, d), x.dtype),
        grid=(grid_b,),
        in_specs=[
            pl.BlockSpec((tb, f2), lambda i: (i, 0)),   # streamed batch tile
            pl.BlockSpec((f2, f1), lambda i: (0, 0)),   # VMEM-resident weights
            pl.BlockSpec((1, f1), lambda i: (0, 0)),
            pl.BlockSpec((f1, d), lambda i: (0, 0)),
            pl.BlockSpec((1, d), lambda i: (0, 0)),
        ],
        out_specs=pl.BlockSpec((tb, d), lambda i: (i, 0)),
        compiler_params=pltpu.CompilerParams(
            dimension_semantics=("parallel",),          # 2 TCs on v7x
        ),
        cost_estimate=cost,
    )(x, w1t, b1r, w2t, b2r)


def reference_forward(x, w1, b1, w2, b2):
    h = jnp.maximum(x @ w1.T + b1, 0.0)
    return h @ w2.T + b2


if __name__ == "__main__":
    # Shapes consistent with the module's __init__:
    #   x_fdim2 = 32 (input features), x_fdim1 = 64 (hidden), ipVec_dim = 128 (output)
    x_fdim2, x_fdim1, ipVec_dim = 32, 64, 128

    key = jax.random.PRNGKey(0)
    kx, k1, k2, k3, k4, kx2 = jax.random.split(key, 6)

    # Deterministic parameter init (PyTorch-Linear-style uniform bounds).
    bound1 = 1.0 / jnp.sqrt(jnp.float32(x_fdim2))
    bound2 = 1.0 / jnp.sqrt(jnp.float32(x_fdim1))
    w1 = jax.random.uniform(k1, (x_fdim1, x_fdim2), jnp.float32, -bound1, bound1)
    b1 = jax.random.uniform(k2, (x_fdim1,), jnp.float32, -bound1, bound1)
    w2 = jax.random.uniform(k3, (ipVec_dim, x_fdim1), jnp.float32, -bound2, bound2)
    b2 = jax.random.uniform(k4, (ipVec_dim,), jnp.float32, -bound2, bound2)

    # One-time repack (outside the per-call hot path).
    w1t, b1r, w2t, b2r = prepare_params(w1, b1, w2, b2)

    # Case 1: tile-divisible batch (grid of 2 "parallel" steps of 128 rows).
    B = 256
    x = jax.random.normal(kx, (B, x_fdim2), dtype=jnp.float32)
    out = jax.block_until_ready(simplenet2_forward(x, w1t, b1r, w2t, b2r))
    ref = reference_forward(x, w1, b1, w2, b2)
    assert out.shape == (B, ipVec_dim), out.shape
    assert jnp.allclose(out, ref, atol=1e-4, rtol=1e-4), "mismatch (divisible B)"

    # Case 2: ragged batch -- exercises the masked last block (no jnp.pad copy).
    B2 = 200
    x2 = jax.random.normal(kx2, (B2, x_fdim2), dtype=jnp.float32)
    out2 = jax.block_until_ready(simplenet2_forward(x2, w1t, b1r, w2t, b2r))
    ref2 = reference_forward(x2, w1, b1, w2, b2)
    assert out2.shape == (B2, ipVec_dim), out2.shape
    assert jnp.allclose(out2, ref2, atol=1e-4, rtol=1e-4), "mismatch (ragged B)"

    print("KERNEL_OK")
</pallas_src>

<mosaic_0001>
module attributes {stable_mosaic.version = 11 : i64} {
  func.func @_mlp_kernel(%arg0: i32, %arg1: memref<128x32xf32, #tpu.memory_space<vmem>>, %arg2: memref<32x64xf32, #tpu.memory_space<vmem>>, %arg3: memref<1x64xf32, #tpu.memory_space<vmem>>, %arg4: memref<64x128xf32, #tpu.memory_space<vmem>>, %arg5: memref<1x128xf32, #tpu.memory_space<vmem>>, %arg6: memref<128x128xf32, #tpu.memory_space<vmem>>) attributes {dimension_semantics = [#tpu.dimension_semantics<parallel>], iteration_bounds = array<i64: 2>, scalar_prefetch = 0 : i64, scratch_operands = 0 : i64, tpu.core_type = #tpu.core_type<tc>, window_params = [{transform_indices = @transform_0, window_bounds = array<i64: 128, 32>}, {pipeline_mode = #tpu.pipeline_mode<synchronous>, transform_indices = @transform_1, window_bounds = array<i64: 32, 64>}, {pipeline_mode = #tpu.pipeline_mode<synchronous>, transform_indices = @transform_2, window_bounds = array<i64: 1, 64>}, {pipeline_mode = #tpu.pipeline_mode<synchronous>, transform_indices = @transform_3, window_bounds = array<i64: 64, 128>}, {pipeline_mode = #tpu.pipeline_mode<synchronous>, transform_indices = @transform_4, window_bounds = array<i64: 1, 128>}, {transform_indices = @transform_5, window_bounds = array<i64: 128, 128>}]} {
    %c0 = arith.constant 0 : index
    %c0_0 = arith.constant 0 : index
    %0 = vector.load %arg1[%c0, %c0_0] : memref<128x32xf32, #tpu.memory_space<vmem>>, vector<128x32xf32>
    %c0_1 = arith.constant 0 : index
    %c0_2 = arith.constant 0 : index
    %1 = vector.load %arg2[%c0_1, %c0_2] : memref<32x64xf32, #tpu.memory_space<vmem>>, vector<32x64xf32>
    %cst = arith.constant dense<0.000000e+00> : vector<128x64xf32>
    %2 = tpu.matmul %0, %1, %cst {dimension_numbers = #tpu.dot_dimension_numbers<[1], [0], [0], [1], [0, 0, 1, 1], [], []>} : vector<128x32xf32>, vector<32x64xf32>, vector<128x64xf32> -> vector<128x64xf32>
    %c0_3 = arith.constant 0 : index
    %c0_4 = arith.constant 0 : index
    %3 = vector.load %arg3[%c0_3, %c0_4] : memref<1x64xf32, #tpu.memory_space<vmem>>, vector<1x64xf32>
    %4 = vector.broadcast %3 : vector<1x64xf32> to vector<128x64xf32>
    %5 = arith.addf %2, %4 : vector<128x64xf32>
    %cst_5 = arith.constant 0.000000e+00 : f32
    %6 = vector.broadcast %cst_5 : f32 to vector<128x64xf32>
    %7 = arith.maximumf %5, %6 : vector<128x64xf32>
    %c0_6 = arith.constant 0 : index
    %c0_7 = arith.constant 0 : index
    %8 = vector.load %arg4[%c0_6, %c0_7] : memref<64x128xf32, #tpu.memory_space<vmem>>, vector<64x128xf32>
    %cst_8 = arith.constant dense<0.000000e+00> : vector<128x128xf32>
    %9 = tpu.matmul %7, %8, %cst_8 {dimension_numbers = #tpu.dot_dimension_numbers<[1], [0], [0], [1], [0, 0, 1, 1], [], []>} : vector<128x64xf32>, vector<64x128xf32>, vector<128x128xf32> -> vector<128x128xf32>
    %c0_9 = arith.constant 0 : index
    %c0_10 = arith.constant 0 : index
    %10 = vector.load %arg5[%c0_9, %c0_10] : memref<1x128xf32, #tpu.memory_space<vmem>>, vector<1x128xf32>
    %11 = vector.broadcast %10 : vector<1x128xf32> to vector<128x128xf32>
    %12 = arith.addf %9, %11 : vector<128x128xf32>
    %c0_11 = arith.constant 0 : index
    %c0_12 = arith.constant 0 : index
    %13 = vector.load %arg6[%c0_11, %c0_12] : memref<128x128xf32, #tpu.memory_space<vmem>>, vector<128x128xf32>
    tpu.vector_store %arg6[%c0_11, %c0_12], %12 {strides = array<i32>} : memref<128x128xf32, #tpu.memory_space<vmem>>, vector<128x128xf32>,
    return
  }
  func.func @transform_0(%arg0: i32) -> (i32, i32) {
    %c0_i32 = arith.constant 0 : i32
    %c0_i32_0 = arith.constant 0 : i32
    return %arg0, %c0_i32 : i32, i32
  }
  func.func @transform_1(%arg0: i32) -> (i32, i32) {
    %c0_i32 = arith.constant 0 : i32
    %c0_i32_0 = arith.constant 0 : i32
    %c0_i32_1 = arith.constant 0 : i32
    return %c0_i32, %c0_i32_0 : i32, i32
  }
  func.func @transform_2(%arg0: i32) -> (i32, i32) {
    %c0_i32 = arith.constant 0 : i32
    %c0_i32_0 = arith.constant 0 : i32
    %c0_i32_1 = arith.constant 0 : i32
    return %c0_i32, %c0_i32_0 : i32, i32
  }
  func.func @transform_3(%arg0: i32) -> (i32, i32) {
    %c0_i32 = arith.constant 0 : i32
    %c0_i32_0 = arith.constant 0 : i32
    %c0_i32_1 = arith.constant 0 : i32
    return %c0_i32, %c0_i32_0 : i32, i32
  }
  func.func @transform_4(%arg0: i32) -> (i32, i32) {
    %c0_i32 = arith.constant 0 : i32
    %c0_i32_0 = arith.constant 0 : i32
    %c0_i32_1 = arith.constant 0 : i32
    return %c0_i32, %c0_i32_0 : i32, i32
  }
  func.func @transform_5(%arg0: i32) -> (i32, i32) {
    %c0_i32 = arith.constant 0 : i32
    %c0_i32_0 = arith.constant 0 : i32
    return %arg0, %c0_i32 : i32, i32
  }
}

</mosaic_0001>

<bundles_post_ra>
// kernel: simplenet2_forward.1
= control target key start
LH: loop header
LB: loop body
LE: loop exit
PB: predicated region body
PF: predicated region fallthrough
CT: control target
= control target key end

     0   :  { %10 = vsyncpa [#allocation3], 0  ;;  %s1295_s0 = inlined_call_operand.vmem [shape: f32[256,32], index: 0, kind: input, shape index: {}]   ;;  %s1296_s1 = inlined_call_operand.vmem [shape: f32[32,64], index: 1, kind: input, shape index: {}]   ;;  %s1297_s2 = inlined_call_operand.vmem [shape: f32[1,64], index: 2, kind: input, shape index: {}]   ;;  %s1298_s3 = inlined_call_operand.vmem [shape: f32[64,128], index: 3, kind: input, shape index: {}]   ;;  %s1299_s4 = inlined_call_operand.vmem [shape: f32[1,128], index: 4, kind: input, shape index: {}]   ;;  %s1300_s5 = inlined_call_operand.hbm [shape: f32[256,128], index: 5, kind: output, shape index: {}]  }
   0x1   :  { %12 = vsyncpa [#allocation3 + $0x1], 0  ;;  %s1079_s18 = smov 0   ;;  %s1081_s19 = smov 0  }
   0x2   :  { %s1083_s20 = smov 0   ;;  %s1085_s21 = smov 0  }
   0x3 LB: > { %s1100_s22 = sadd.s32 4294967295, %s1044_s21   ;;  %s764_s23 = sadd.s32 4294967294, %s1044_s21   ;;  %s1044_s21 = sphi %s1085_s21, %s1306_s21   ;;  %s1040_s20 = sphi %s1083_s20, %s1305_s20   ;;  %s1036_s19 = sphi %s1081_s19, %s1304_s19   ;;  %s1032_s18 = sphi %s1079_s18, %s1303_s18  }
   0x4   : > { %s1104_s24 = sadd.s32 1, %s1044_s21   ;;  %s135_s25 = sadd.s32 1, %s1040_s20 }
   0x5   : > { %s132_s26 = ssub.s32 %s1044_s21, %s1104_s24  ;;  %p145_p0 = scmp.ne.s32.totalorder %s1040_s20, %s1036_s19 }
   0x6   : > { %p133_p1 = scmp.eq.s32.totalorder %s132_s26, 0  ;;  %p146_p2 = scmp.eq.s32.totalorder %s1100_s22, 1 }
   0x7   : > { %p151_p3 = scmp.ne.s32.totalorder %s1036_s19, %s1032_s18  ;;  %p152_p4 = scmp.eq.s32.totalorder %s764_s23, 1 }
   0x8   : > { %s1115_s27 = scalar_select %p133_p1, %s1040_s20, %s135_s25  }
   0x9   : > { %p1117_p5 = por %p146_p2, %p145_p0  ;;  %p1121_p6 = por %p152_p4, %p151_p3 }
   0xa   : > { %p767_p7 = scmp.ge.s32.totalorder %s1044_s21, 1  ;;  %p191_p8 = scmp.lt.s32.totalorder %s1044_s21, 3 }
   0xc   : > { %p192_p9 = pnand %p767_p7, %p191_p8 }
   0xd   : > { %s769_s9 = sshll.u32 (!%p192_p9), %s1100_s22, 4  ;;  %s216_s26 = sand.u32 (!%p192_p9), 1, %s1036_s19  }
   0xe   : > { %195 = sbr.rel (%p192_p9) target bundleno = 467 (0x1d3), region = 40  ;;  %p220_p10 = scmp.lt.s32.totalorder (!%p192_p9), %s769_s9, 31 }
   0xf   : > { %s768_s30 = sshll.u32 (!%p192_p9), %s216_s26, 7  ;;  %s1046_s15 = smov (!%p192_p9), [#allocation2]  }
  0x10   : > { %s1226_s8 = scalar_lea.vmem (!%p192_p9), [#allocation2], %s768_s30  ;;  %s988_s16 = sshll.u32 (!%p192_p9), %s1046_s15, 4  ;;  %s989_s16 = int_to_ptr.vmem [resolvable:$false] %s988_s16 }
  0x11   : > { %s702_s10 = sshll.u32 (!%p192_p9), %s1226_s8, 4  ;;  %s990_s17 = scalar_lea.vmem (!%p192_p9), %s989_s16, 4096  ;;  %s1249_s10 = int_to_ptr.vmem [resolvable:$true] %s702_s10 }
  0x12   : > { %s984_s14 = scalar_lea.vmem (!%p192_p9), %s1249_s10, 2048  ;;  %p991_p0 = scmp.lt.s32.totalorder (!%p192_p9), %s1249_s10, %s989_s16 }
  0x13   : > { %v245_v0 = vld [vmem:[%s1296_s1 + $0x18] sm:$0xff]  ;;  %v244_v1 = vld [vmem:[%s1296_s1 + $0x10] sm:$0xff]  ;;  %v243_v3 = vld [vmem:[%s1296_s1 + $0x8] sm:$0xff]  ;;  %s1308_s9 = smov (!%p220_p10, %s769_s9), 31  ;;  %vm253_vm0 = vcmask 261120   ;;  %vm478_vm1 = vcmask 523264   ;;  %p985_p11 = scmp.ne.s32.totalorder %s1249_s10, %s984_s14 }
  0x14   : > { %855 = vmatprep.subr.mxu0 %v245_v0  ;;  %v470_v2 = vld [vmem:[%s1298_s3 + $0x38] sm:$0xff]  ;;  %v469_v4 = vld [vmem:[%s1298_s3 + $0x30] sm:$0xff]  ;;  %v242_v5 = vld [vmem:[%s1296_s1] sm:$0xff]  ;;  %s770_s23 = sshll.u32 %s1308_s9, 3  ;;  %s810_s9 = sshll.u32 %s1100_s22, 11 }
  0x15   : > { %856 = vmatpush3.msra.mxu0 %v245_v0  ;;  %927 = vmatprep.subr.mxu1 %v470_v2  ;;  %v468_v6 = vld [vmem:[%s1298_s3 + $0x28] sm:$0xff]  ;;  %s1152_s7 = scalar_lea.vmem %s1295_s0, %s770_s23  ;;  %v467_v11 = vld [vmem:[%s1298_s3 + $0x20] sm:$0xff]  ;;  %v466_v24 = vld [vmem:[%s1298_s3 + $0x18] sm:$0xff]  ;;  %s1247_s13 = scalar_lea.hbm %s1300_s5, %s810_s9 }
  0x16   : > { %857 = vmatprep.subr.mxu0 %v244_v1  ;;  %935 = vmatpush3.msra.mxu1 %v470_v2  ;;  %v226_v7 = vld [vmem:[%s1152_s7] sm:$0xff]  ;;  %v227_v8 = vld [vmem:[%s1152_s7 + $0x8] sm:$0xff]  ;;  %v228_v9 = vld [vmem:[%s1152_s7 + $0x10] sm:$0xff]  ;;  %s1255_s22 = scalar_lea.sflag [#allocation3], %s216_s26  ;;  %p986_p12 = pnand %p985_p11, %p1117_p5 }
  0x17   : > { %858 = vmatpush3.msra.mxu0 %v244_v1  ;;  %928 = vmatprep.subr.mxu1 %v469_v4  ;;  %v229_v10 = vld [vmem:[%s1152_s7 + $0x18] sm:$0xff]  ;;  %v230_v12 = vld [vmem:[%s1152_s7 + $0x20] sm:$0xff]  ;;  %v231_v13 = vld [vmem:[%s1152_s7 + $0x28] sm:$0xff]  ;;  %p992_p1 = scmp.lt.s32.totalorder %s990_s17, %s984_s14 }
  0x18   : > { %859 = vmatprep.subr.mxu0 %v243_v3  ;;  %936 = vmatpush3.msra.mxu1 %v469_v4  ;;  %v232_v14 = vld [vmem:[%s1152_s7 + $0x30] sm:$0xff]  ;;  %v233_v15 = vld [vmem:[%s1152_s7 + $0x38] sm:$0xff]  ;;  %v234_v16 = vld [vmem:[%s1152_s7 + $0x40] sm:$0xff]  ;;  %p987_p13 = pneg %p986_p12 }
  0x19   : > { %860 = vmatpush3.msra.mxu0 %v243_v3  ;;  %929 = vmatprep.subr.mxu1 %v468_v6  ;;  %v235_v17 = vld [vmem:[%s1152_s7 + $0x48] sm:$0xff]  ;;  %v236_v18 = vld [vmem:[%s1152_s7 + $0x50] sm:$0xff]  ;;  %v237_v19 = vld [vmem:[%s1152_s7 + $0x58] sm:$0xff]  ;;  %p993_p2 = por %p992_p1, %p991_p0 }
  0x1a   : > { %861 = vmatprep.subr.mxu0 %v242_v5  ;;  %937 = vmatpush3.msra.mxu1 %v468_v6  ;;  %v238_v20 = vld [vmem:[%s1152_s7 + $0x60] sm:$0xff]  ;;  %v239_v21 = vld [vmem:[%s1152_s7 + $0x68] sm:$0xff]  ;;  %v240_v22 = vld [vmem:[%s1152_s7 + $0x70] sm:$0xff] }
  0x1b   : > { %862 = vmatpush3.msra.mxu0 %v242_v5  ;;  %863 = vmatprep.mubr.msk.f32.mxu0 %vm253_vm0, %v226_v7  ;;  %v241_v23 = vld [vmem:[%s1152_s7 + $0x78] sm:$0xff]  ;;  %v465_v25 = vld [vmem:[%s1298_s3 + $0x10] sm:$0xff]  ;;  %v464_v26 = vld [vmem:[%s1298_s3 + $0x8] sm:$0xff]  ;;  %p994_p3 = pnand %p993_p2, %p987_p13 }
  0x1c   : > { %864 = vmatmul.mubr.msk.f32.vlgmr.msra.gmra.mxu0 %vm253_vm0, %v227_v8  ;;  %887 = vmatprep.subr.mxu0 %v470_v2  ;;  %v463_v27 = vld [vmem:[%s1298_s3] sm:$0xff] }
  0x1d   : > { %866 = vmatprep.mubr.msk.f32.mxu0 %vm253_vm0, %v228_v9  ;;  %888 = vmatpush3.msra.mxu0 %v470_v2  ;;  %v771_v28 = vld [vmem:[%s1297_s2] ss:$0 sm:$0xff] }
  0x1e   : > { %889 = vmatprep.subr.mxu0 %v469_v4  ;;  %930 = vmatprep.subr.mxu1 %v467_v11 }
  0x1f   : > { %890 = vmatpush3.msra.mxu0 %v469_v4  ;;  %938 = vmatpush3.msra.mxu1 %v467_v11 }
  0x20   : > { %867 = vmatmul.mubr.msk.f32.gmra.mxu0 %vm253_vm0, %v229_v10  ;;  %891 = vmatprep.subr.mxu0 %v468_v6 }
  0x21   : > { %869 = vmatprep.mubr.msk.f32.mxu0 %vm253_vm0, %v230_v12  ;;  %892 = vmatpush3.msra.mxu0 %v468_v6 }
  0x22   : > { %893 = vmatprep.subr.mxu0 %v467_v11  ;;  %931 = vmatprep.subr.mxu1 %v466_v24 }
  0x23   : > { %894 = vmatpush3.msra.mxu0 %v467_v11  ;;  %939 = vmatpush3.msra.mxu1 %v466_v24 }
  0x24   : > { %870 = vmatmul.mubr.msk.f32.gmra.mxu0 %vm253_vm0, %v231_v13  ;;  %895 = vmatprep.subr.mxu0 %v466_v24  ;;  %v788_v13 = vld [vmem:[%s1299_s4] ss:$0 sm:$0xff] }
  0x25   : > { %872 = vmatprep.mubr.msk.f32.mxu0 %vm253_vm0, %v232_v14  ;;  %896 = vmatpush3.msra.mxu0 %v466_v24 }
  0x26   : > { %897 = vmatprep.subr.mxu0 %v465_v25  ;;  %932 = vmatprep.subr.mxu1 %v465_v25 }
  0x27   : > { %898 = vmatpush3.msra.mxu0 %v465_v25  ;;  %940 = vmatpush3.msra.mxu1 %v465_v25 }
  0x28   : > { %873 = vmatmul.mubr.msk.f32.gmra.mxu0 %vm253_vm0, %v233_v15  ;;  %899 = vmatprep.subr.mxu0 %v464_v26 }
  0x29   : > { %875 = vmatprep.mubr.msk.f32.mxu0 %vm253_vm0, %v234_v16  ;;  %933 = vmatprep.subr.mxu1 %v464_v26 }
  0x2a   : > { %900 = vmatpush3.msra.mxu0 %v464_v26  ;;  %941 = vmatpush3.msra.mxu1 %v464_v26 }
  0x2b   : > { %901 = vmatprep.subr.mxu0 %v463_v27  ;;  %934 = vmatprep.subr.mxu1 %v463_v27 }
  0x2c   : > { %876 = vmatmul.mubr.msk.f32.gmra.mxu0 %vm253_vm0, %v235_v17  ;;  %942 = vmatpush3.msra.mxu1 %v463_v27 }
  0x2d   : > { %878 = vmatprep.mubr.msk.f32.mxu0 %vm253_vm0, %v236_v18  ;;  %902 = vmatpush3.msra.mxu0 %v463_v27 }
  0x30   : > { %879 = vmatmul.mubr.msk.f32.gmra.mxu0 %vm253_vm0, %v237_v19 }
  0x31   : > { %881 = vmatprep.mubr.msk.f32.mxu0 %vm253_vm0, %v238_v20 }
  0x34   : > { %882 = vmatmul.mubr.msk.f32.gmra.mxu0 %vm253_vm0, %v239_v21 }
  0x35   : > { %884 = vmatprep.mubr.msk.f32.mxu0 %vm253_vm0, %v240_v22 }
  0x38   : > { %885 = vmatmul.mubr.msk.f32.gmra.mxu0 %vm253_vm0, %v241_v23 }
  0xdc   : > { %v865_v29 = vpop.f32.mrf.mxu0 }
  0xdd   : > { %v374_v30 = vadd.f32 %v865_v29, %v771_v28 }
  0xde   : > { %v368_v31 = vpop.f32.mrf.mxu0 }
  0xdf   : > { %v369_v32 = vadd.f32 %v771_v28, %v368_v31  ;;  %v448_v35 = vmax.f32 %v374_v30, 0.0 }
  0xe0   : > { %v868_v33 = vpop.f32.mrf.mxu0 }
  0xe1   : > { %v447_v34 = vmax.f32 %v369_v32, 0.0  ;;  %v384_v36 = vadd.f32 %v868_v33, %v771_v28 }
  0xe2   : > { %v378_v37 = vpop.f32.mrf.mxu0 }
  0xe3   : > { %v379_v38 = vadd.f32 %v771_v28, %v378_v37  ;;  %903 = vmatprep.mubr.msk.f32.mxu0 %vm478_vm1, %v447_v34  ;;  %v450_v41 = vmax.f32 %v384_v36, 0.0 }
  0xe4   : > { %v871_v39 = vpop.f32.mrf.mxu0  ;;  %904 = vmatmul.mubr.msk.f32.vlgmr.msra.gmra.mxu0 %vm478_vm1, %v448_v35 }
  0xe5   : > { %v449_v40 = vmax.f32 %v379_v38, 0.0  ;;  %v394_v42 = vadd.f32 %v871_v39, %v771_v28 }
  0xe6   : > { %v388_v43 = vpop.f32.mrf.mxu0 }
  0xe7   : > { %v389_v44 = vadd.f32 %v771_v28, %v388_v43  ;;  %906 = vmatprep.mubr.msk.f32.mxu1 %vm478_vm1, %v449_v40  ;;  %v452_v47 = vmax.f32 %v394_v42, 0.0 }
  0xe8   : > { %v874_v45 = vpop.f32.mrf.mxu0  ;;  %907 = vmatmul.mubr.msk.f32.vlgmr.msra.gmra.mxu1 %vm478_vm1, %v450_v41 }
  0xe9   : > { %v451_v46 = vmax.f32 %v389_v44, 0.0  ;;  %v404_v48 = vadd.f32 %v874_v45, %v771_v28 }
  0xea   : > { %v398_v49 = vpop.f32.mrf.mxu0 }
  0xeb   : > { %v399_v50 = vadd.f32 %v771_v28, %v398_v49  ;;  %909 = vmatprep.mubr.msk.f32.mxu1 %vm478_vm1, %v451_v46  ;;  %v454_v53 = vmax.f32 %v404_v48, 0.0 }
  0xec   : > { %v877_v51 = vpop.f32.mrf.mxu0  ;;  %910 = vmatmul.mubr.msk.f32.gmra.mxu1 %vm478_vm1, %v452_v47 }
  0xed   : > { %v453_v52 = vmax.f32 %v399_v50, 0.0  ;;  %v414_v54 = vadd.f32 %v877_v51, %v771_v28 }
  0xee   : > { %v408_v55 = vpop.f32.mrf.mxu0 }
  0xef   : > { %v409_v56 = vadd.f32 %v771_v28, %v408_v55  ;;  %912 = vmatprep.mubr.msk.f32.mxu1 %vm478_vm1, %v453_v52  ;;  %v456_v59 = vmax.f32 %v414_v54, 0.0 }
  0xf0   : > { %v880_v57 = vpop.f32.mrf.mxu0  ;;  %913 = vmatmul.mubr.msk.f32.gmra.mxu1 %vm478_vm1, %v454_v53 }
  0xf1   : > { %v455_v58 = vmax.f32 %v409_v56, 0.0  ;;  %v424_v60 = vadd.f32 %v880_v57, %v771_v28 }
  0xf2   : > { %v418_v61 = vpop.f32.mrf.mxu0 }
  0xf3   : > { %v419_v62 = vadd.f32 %v771_v28, %v418_v61  ;;  %915 = vmatprep.mubr.msk.f32.mxu1 %vm478_vm1, %v455_v58  ;;  %v458_v1 = vmax.f32 %v424_v60, 0.0 }
  0xf4   : > { %v883_v63 = vpop.f32.mrf.mxu0  ;;  %916 = vmatmul.mubr.msk.f32.gmra.mxu1 %vm478_vm1, %v456_v59 }
  0xf5   : > { %v457_v0 = vmax.f32 %v419_v62, 0.0  ;;  %v434_v2 = vadd.f32 %v883_v63, %v771_v28 }
  0xf6   : > { %v428_v3 = vpop.f32.mrf.mxu0 }
  0xf7   : > { %v429_v4 = vadd.f32 %v771_v28, %v428_v3  ;;  %918 = vmatprep.mubr.msk.f32.mxu1 %vm478_vm1, %v457_v0  ;;  %v460_v7 = vmax.f32 %v434_v2, 0.0 }
  0xf8   : > { %v886_v5 = vpop.f32.mrf.mxu0  ;;  %919 = vmatmul.mubr.msk.f32.gmra.mxu1 %vm478_vm1, %v458_v1 }
  0xf9   : > { %v459_v6 = vmax.f32 %v429_v4, 0.0  ;;  %v444_v8 = vadd.f32 %v886_v5, %v771_v28 }
  0xfa   : > { %v438_v9 = vpop.f32.mrf.mxu0 }
  0xfb   : > { %v439_v10 = vadd.f32 %v771_v28, %v438_v9  ;;  %921 = vmatprep.mubr.msk.f32.mxu1 %vm478_vm1, %v459_v6  ;;  %v462_v12 = vmax.f32 %v444_v8, 0.0 }
  0xfc   : > { %922 = vmatmul.mubr.msk.f32.gmra.mxu1 %vm478_vm1, %v460_v7 }
  0xfd   : > { %v461_v11 = vmax.f32 %v439_v10, 0.0 }
  0xff   : > { %924 = vmatprep.mubr.msk.f32.mxu1 %vm478_vm1, %v461_v11 }
 0x100   : > { %925 = vmatmul.mubr.msk.f32.gmra.mxu1 %vm478_vm1, %v462_v12 }
 0x1a4   : > { %v905_v14 = vpop.f32.mrf.mxu0 }
 0x1a5   : > { %v599_v15 = vadd.f32 %v905_v14, %v788_v13 }
 0x1a6   : > { %v593_v16 = vpop.f32.mrf.mxu0 }
 0x1a7   : > { %673 = vst [vmem:[%s1226_s8 + $0x8] sm:$0xff] %v599_v15  ;;  %v594_v17 = vadd.f32 %v788_v13, %v593_v16 }
 0x1a8   : > { %v908_v18 = vpop.f32.mrf.mxu1 }
 0x1a9   : > { %672 = vst [vmem:[%s1226_s8] sm:$0xff] %v594_v17  ;;  %v609_v19 = vadd.f32 %v908_v18, %v788_v13 }
 0x1aa   : > { %v603_v20 = vpop.f32.mrf.mxu1 }
 0x1ab   : > { %675 = vst [vmem:[%s1226_s8 + $0x18] sm:$0xff] %v609_v19  ;;  %v604_v21 = vadd.f32 %v788_v13, %v603_v20 }
 0x1ac   : > { %v911_v22 = vpop.f32.mrf.mxu1 }
 0x1ad   : > { %674 = vst [vmem:[%s1226_s8 + $0x10] sm:$0xff] %v604_v21  ;;  %v619_v23 = vadd.f32 %v911_v22, %v788_v13 }
 0x1ae   : > { %v613_v24 = vpop.f32.mrf.mxu1 }
 0x1af   : > { %677 = vst [vmem:[%s1226_s8 + $0x28] sm:$0xff] %v619_v23  ;;  %v614_v25 = vadd.f32 %v788_v13, %v613_v24 }
 0x1b0   : > { %v914_v26 = vpop.f32.mrf.mxu1 }
 0x1b1   : > { %676 = vst [vmem:[%s1226_s8 + $0x20] sm:$0xff] %v614_v25  ;;  %v629_v27 = vadd.f32 %v914_v26, %v788_v13 }
 0x1b2   : > { %v623_v28 = vpop.f32.mrf.mxu1 }
 0x1b3   : > { %679 = vst [vmem:[%s1226_s8 + $0x38] sm:$0xff] %v629_v27  ;;  %v624_v29 = vadd.f32 %v788_v13, %v623_v28 }
 0x1b4   : > { %v917_v30 = vpop.f32.mrf.mxu1 }
 0x1b5   : > { %678 = vst [vmem:[%s1226_s8 + $0x30] sm:$0xff] %v624_v29  ;;  %v639_v31 = vadd.f32 %v917_v30, %v788_v13 }
 0x1b6   : > { %v633_v32 = vpop.f32.mrf.mxu1 }
 0x1b7   : > { %681 = vst [vmem:[%s1226_s8 + $0x48] sm:$0xff] %v639_v31  ;;  %v634_v33 = vadd.f32 %v788_v13, %v633_v32 }
 0x1b8   : > { %v920_v34 = vpop.f32.mrf.mxu1 }
 0x1b9   : > { %680 = vst [vmem:[%s1226_s8 + $0x40] sm:$0xff] %v634_v33  ;;  %v649_v35 = vadd.f32 %v920_v34, %v788_v13 }
 0x1ba   : > { %v643_v36 = vpop.f32.mrf.mxu1 }
 0x1bb   : > { %683 = vst [vmem:[%s1226_s8 + $0x58] sm:$0xff] %v649_v35  ;;  %v644_v37 = vadd.f32 %v788_v13, %v643_v36 }
 0x1bc   : > { %v923_v38 = vpop.f32.mrf.mxu1 }
 0x1bd   : > { %682 = vst [vmem:[%s1226_s8 + $0x50] sm:$0xff] %v644_v37  ;;  %v659_v39 = vadd.f32 %v923_v38, %v788_v13 }
 0x1be   : > { %v653_v40 = vpop.f32.mrf.mxu1 }
 0x1bf   : > { %685 = vst [vmem:[%s1226_s8 + $0x68] sm:$0xff] %v659_v39  ;;  %v654_v41 = vadd.f32 %v788_v13, %v653_v40 }
 0x1c0   : > { %v926_v42 = vpop.f32.mrf.mxu1 }
 0x1c1   : > { %684 = vst [vmem:[%s1226_s8 + $0x60] sm:$0xff] %v654_v41  ;;  %v669_v43 = vadd.f32 %v926_v42, %v788_v13 }
 0x1c2   : > { %v663_v44 = vpop.f32.mrf.mxu1 }
 0x1c3   : > { %687 = vst [vmem:[%s1226_s8 + $0x78] sm:$0xff] %v669_v43  ;;  %v664_v45 = vadd.f32 %v788_v13, %v663_v44 }
 0x1c5   : > { %686 = vst [vmem:[%s1226_s8 + $0x70] sm:$0xff] %v664_v45 }
 0x1c6   : > { %997 = shalt.err (!%p994_p3)
}
 0x1c7   : > { %s998_s23 = scalar_lea.hbm %s1247_s13, 2048  ;;  %s1002_s30 = scalar_lea.hbm %s1300_s5, 4096 }
 0x1c8   : > { %p999_p4 = scmp.ne.s32.totalorder %s1247_s13, %s998_s23  ;;  %p1003_p9 = scmp.lt.s32.totalorder %s1247_s13, %s1300_s5 }
 0x1c9   : > { %p1004_p10 = scmp.lt.s32.totalorder %s1002_s30, %s998_s23 }
 0x1ca   : > { %p1000_p7 = pnand %p999_p4, %p1117_p5 }
 0x1cb   : > { %p1005_p11 = por %p1004_p10, %p1003_p9 }
 0x1cc   : > { %p1001_p8 = pneg %p1000_p7 }
 0x1ce   : > { %p1006_p12 = pnand %p1005_p11, %p1001_p8 }
 0x1d0   : > { %1009 = shalt.err (!%p1006_p12)
}
 0x1d1   : > { %s1047_s8 = smov 128   ;;  %s1048_s9 = smov 8  }
 0x1d2   : > { %943 = dma.vmem_to_hbm [thread:$0]  (%p1117_p5), %s1249_s10, 2048, %s1247_s13, %s1255_s22, %s1047_s8, %s1047_s8, %s1048_s9  }
 0x1d3 PF: > { %p949_p13 = scmp.ge.s32.totalorder %s1044_s21, 2  ;;  %s717_s11 = sand.u32 1, %s1032_s18  }
 0x1d4   : > { %s718_s12 = scalar_lea.sflag [#allocation3], %s717_s11 }
 0x1d5   : > { %p946_p0 = pnand %p949_p13, %p1121_p6 }
 0x1d7   : > { %p947_p1 = pneg %p946_p0 }
 0x1d9   : > { %1027 = dma.done.wait (%p947_p1), %s718_s12, 2048  }
 0x1da   : > { %1029 = vsyncadd (%p947_p1), %s718_s12, 4294965248  ;;  %p15_p2 = scmp.ge.s32.totalorder %s1104_s24, 4   ;;  %s1303_s18 = smov %s1036_s19 }
 0x1db   : > { %s1304_s19 = smov %s1040_s20  ;;  %s1305_s20 = smov %s1115_s27 }
 0x1dc   : > { %s1306_s21 = smov %s1104_s24  ;;  %17 = sbr.rel (!%p15_p2) target bundleno = 3 (0x3), region = 75 }
 0x1e1   :  { %723 = vsyncpa [#allocation3], 1 }
 0x1e2   :  { %725 = vsyncpa [#allocation3 + $0x1], 1 }

</bundles_post_ra>
